<compile_context>
chip_gen: v5e
topology: v5e:2x2
jax: 0.10.0
libtpu: 0.0.40
codegen_flags: <defaults>
</compile_context>

<pallas_src>
import functools

import jax
import jax.numpy as jnp
from jax.experimental import pallas as pl
from jax.experimental.pallas import tpu as pltpu


def _round_up(v, m):
    return (v + m - 1) // m * m


def _vmem_capacity_bytes():
    """Generation-aware VMEM capacity (v5e/v6e: 128 MiB, v7x: 64 MiB)."""
    default = 64 * 2**20  # conservative (v7x-sized) fallback
    try:
        fn = getattr(pltpu, "get_tpu_info", None)
        if fn is None:
            return default
        return int(getattr(fn(), "vmem_capacity_bytes", default))
    except Exception:
        return default


# --------------------------------------------------------------------------
# Fused single-call fast path: the whole problem is resident in VMEM.
# --------------------------------------------------------------------------
def _fused_fcrb_kernel(x_ref, w_ref, b_ref, g_ref, be_ref, o_ref, *,
                       activation, eps, n_rows):
    a = x_ref[...].astype(w_ref.dtype)                       # bf16 MXU operands
    y = jnp.dot(a, w_ref[...], preferred_element_type=jnp.float32)
    y = y + b_ref[...]
    if activation:
        y = jnp.maximum(y, 0.0)
    # Exact (centered) batch statistics in f32; no row padding in this path.
    mean = jnp.sum(y, axis=0, keepdims=True) * (1.0 / n_rows)
    d = y - mean
    var = jnp.sum(d * d, axis=0, keepdims=True) * (1.0 / n_rows)
    invstd = jax.lax.rsqrt(var + eps)
    scale = g_ref[...] * invstd
    shift = be_ref[...] - mean * scale
    o_ref[...] = (y * scale + shift).astype(o_ref.dtype)


# --------------------------------------------------------------------------
# Two-pass path, pass 1: Linear + ReLU + per-tile partial batch statistics.
# --------------------------------------------------------------------------
def _fc_relu_stats_kernel(x_ref, w_ref, b_ref, y_ref, stats_ref, *,
                          activation, n_rows, tile_m, n_row_tiles):
    a = x_ref[...].astype(w_ref.dtype)                       # bf16 MXU operands
    y = jnp.dot(a, w_ref[...], preferred_element_type=jnp.float32)
    y = y + b_ref[...]
    if activation:
        y = jnp.maximum(y, 0.0)
    # Stage y for pass 2 in the narrow MXU dtype; stats use the f32 value.
    y_ref[...] = y.astype(y_ref.dtype)

    def write_stats(yv, mask, cnt):
        s = jnp.sum(yv, axis=0, keepdims=True)               # row 0: sum
        mu = s * (1.0 / cnt)
        d = yv - mu
        if mask is not None:
            d = jnp.where(mask, d, 0.0)
        m2 = jnp.sum(d * d, axis=0, keepdims=True)           # row 1: M2 (tile)
        stats_ref[0:2, :] = jnp.concatenate([s, m2], axis=0)  # one stacked store

    rem = n_rows % tile_m
    if rem == 0:
        # All row tiles are full: no mask, no iota/compare/select.
        write_stats(y, None, tile_m)
    else:
        i = pl.program_id(0)
        last = n_row_tiles - 1

        @pl.when(i != last)
        def _():
            write_stats(y, None, tile_m)

        @pl.when(i == last)
        def _():
            row = jax.lax.broadcasted_iota(jnp.int32, y.shape, 0)
            valid = row < rem
            write_stats(jnp.where(valid, y, 0.0), valid, rem)


# --------------------------------------------------------------------------
# Two-pass path, pass 2: fused BatchNorm normalize + affine (single FMA).
# --------------------------------------------------------------------------
def _bn_scale_shift_kernel(y_ref, scale_ref, shift_ref, o_ref):
    yv = y_ref[...].astype(jnp.float32)
    o_ref[...] = (yv * scale_ref[...] + shift_ref[...]).astype(o_ref.dtype)


# --------------------------------------------------------------------------
# Parameter preparation (constant per layer -> hoist out of the hot path).
# --------------------------------------------------------------------------
def make_fcrb_params(weight, bias, gamma, beta, mxu_dtype=jnp.bfloat16):
    """Transpose + lane-pad + cast the layer parameters once."""
    f32 = jnp.float32
    Fout, Fin = weight.shape
    fin_p = _round_up(max(Fin, 128), 128)
    fout_p = _round_up(max(Fout, 128), 128)
    w_p = jnp.zeros((fin_p, fout_p), f32).at[:Fin, :Fout].set(
        jnp.transpose(weight).astype(f32)).astype(mxu_dtype)
    b_p = jnp.zeros((1, fout_p), f32).at[0, :Fout].set(bias.astype(f32))
    g_p = jnp.zeros((1, fout_p), f32).at[0, :Fout].set(gamma.astype(f32))
    be_p = jnp.zeros((1, fout_p), f32).at[0, :Fout].set(beta.astype(f32))
    return dict(w=w_p, b=b_p, gamma=g_p, beta=be_p, fin=Fin, fout=Fout)


def fcrb_forward(x, params, *, activation=True, eps=1e-5,
                 tile_m=512, tile_n=512, force_two_pass=False):
    """x: (N, in_features) -> (N, out_features), training-mode BatchNorm."""
    f32 = jnp.float32
    N, Fin = x.shape
    assert params["fin"] == Fin
    w_p, b_p, g_p, be_p = params["w"], params["b"], params["gamma"], params["beta"]
    Fout = params["fout"]
    fin_p, fout_p = w_p.shape
    stage_dtype = w_p.dtype                     # bf16 by default, f32 escape hatch
    x_itemsize = x.dtype.itemsize
    w_itemsize = jnp.dtype(stage_dtype).itemsize
    s_itemsize = w_itemsize

    # Feature-pad x only when needed; the row axis is never padded (the ragged
    # last row tile is masked out of the statistics in-kernel).
    if Fin != fin_p:
        x_pf = jnp.zeros((N, fin_p), x.dtype).at[:, :Fin].set(x)
    else:
        x_pf = x

    vmem_cap = _vmem_capacity_bytes()

    # ---------------- fused fast path --------------------------------------
    fused_bytes = (N * fin_p * x_itemsize + fin_p * fout_p * w_itemsize
                   + 2 * N * fout_p * 4 + 8 * fout_p * 4)
    if (not force_two_pass) and fused_bytes <= int(0.35 * vmem_cap):
        kernel = functools.partial(_fused_fcrb_kernel, activation=activation,
                                   eps=eps, n_rows=N)
        out_p = pl.pallas_call(
            kernel,
            out_shape=jax.ShapeDtypeStruct((N, fout_p), f32),
            compiler_params=pltpu.CompilerParams(
                vmem_limit_bytes=int(min(0.75 * vmem_cap,
                                         max(4 * fused_bytes, 32 * 2**20)))),
        )(x_pf, w_p, b_p, g_p, be_p)
        return out_p[:, :Fout]

    # ---------------- general two-pass path --------------------------------
    tile_m = max(8, _round_up(min(int(tile_m), _round_up(N, 8)), 8))
    tile_n = max(128, _round_up(min(int(tile_n), fout_p), 128))

    budget = int(0.55 * vmem_cap)

    def est(tm, tn):
        pass1 = (2 * tm * fin_p * x_itemsize       # x tile (double-buffered)
                 + 2 * fin_p * tn * w_itemsize     # weight tile (double-buffered)
                 + 2 * tm * tn * s_itemsize        # staged y out tile
                 + 2 * 8 * tn * 4                  # partial stats out tile
                 + 2 * tn * 4)                     # bias tile
        pass2 = (2 * tm * tn * s_itemsize          # staged y in tile
                 + 2 * tm * tn * 4                 # f32 out tile
                 + 4 * tn * 4)                     # scale / shift tiles
        return max(pass1, pass2)

    while est(tile_m, tile_n) > budget and (tile_m > 8 or tile_n > 128):
        w_tile_bytes = fin_p * tile_n * w_itemsize
        x_tile_bytes = tile_m * fin_p * x_itemsize
        if tile_n > 128 and (w_tile_bytes >= x_tile_bytes or tile_m <= 8):
            tile_n = max(128, _round_up(tile_n // 2, 128))
        else:
            tile_m = max(8, _round_up(tile_m // 2, 8))

    n_i = pl.cdiv(N, tile_m)
    n_j = pl.cdiv(fout_p, tile_n)
    mp = n_i * tile_m
    vmem_limit = int(min(0.75 * vmem_cap,
                         max(2 * est(tile_m, tile_n), 32 * 2**20)))

    kernel1 = functools.partial(_fc_relu_stats_kernel, activation=activation,
                                n_rows=N, tile_m=tile_m, n_row_tiles=n_i)

    # Pass 1: tiled Linear + ReLU, staged y + per-tile partial statistics.
    y, stats = pl.pallas_call(
        kernel1,
        out_shape=(jax.ShapeDtypeStruct((mp, fout_p), stage_dtype),
                   jax.ShapeDtypeStruct((8 * n_i, fout_p), f32)),
        grid_spec=pltpu.PrefetchScalarGridSpec(
            num_scalar_prefetch=0,
            grid=(n_i, n_j),
            in_specs=[pl.BlockSpec((tile_m, fin_p), lambda i, j: (i, 0)),
                      pl.BlockSpec((fin_p, tile_n), lambda i, j: (0, j)),
                      pl.BlockSpec((1, tile_n), lambda i, j: (0, j))],
            out_specs=[pl.BlockSpec((tile_m, tile_n), lambda i, j: (i, j)),
                       pl.BlockSpec((8, tile_n), lambda i, j: (i, j))]),
        compiler_params=pltpu.CompilerParams(
            dimension_semantics=("parallel", "parallel"),
            vmem_limit_bytes=vmem_limit),
    )(x_pf, w_p, b_p)

    # Tiny O(F) glue: Chan-style parallel-variance combine of the per-tile
    # (count, mean, M2) partials -> fused BN coefficients.
    st = stats.reshape(n_i, 8, fout_p)
    sums = st[:, 0, :]
    m2s = st[:, 1, :]
    counts = jnp.minimum(tile_m, N - jnp.arange(n_i) * tile_m).astype(f32)[:, None]
    tile_means = sums / counts
    mean = jnp.sum(sums, axis=0) / N
    var = (jnp.sum(m2s, axis=0)
           + jnp.sum(counts * (tile_means - mean[None, :]) ** 2, axis=0)) / N
    var = jnp.maximum(var, 0.0)
    invstd = jax.lax.rsqrt(var + eps)
    scale = (g_p[0] * invstd)[None, :]
    shift = (be_p[0] - mean * g_p[0] * invstd)[None, :]

    # Pass 2: tiled normalize + affine (pure streaming FMA).
    out_p = pl.pallas_call(
        _bn_scale_shift_kernel,
        out_shape=jax.ShapeDtypeStruct((mp, fout_p), f32),
        grid_spec=pltpu.PrefetchScalarGridSpec(
            num_scalar_prefetch=0,
            grid=(n_i, n_j),
            in_specs=[pl.BlockSpec((tile_m, tile_n), lambda i, j: (i, j)),
                      pl.BlockSpec((1, tile_n), lambda i, j: (0, j)),
                      pl.BlockSpec((1, tile_n), lambda i, j: (0, j))],
            out_specs=pl.BlockSpec((tile_m, tile_n), lambda i, j: (i, j))),
        compiler_params=pltpu.CompilerParams(
            dimension_semantics=("parallel", "parallel"),
            vmem_limit_bytes=vmem_limit),
    )(y, scale, shift)

    return out_p[:N, :Fout]


def _reference(x, weight, bias, gamma, beta, *, activation=True, eps=1e-5):
    """Pure-JAX reference: Linear -> ReLU -> BatchNorm1d (training batch stats)."""
    y = x @ jnp.transpose(weight) + bias[None, :]
    if activation:
        y = jnp.maximum(y, 0.0)
    mean = jnp.mean(y, axis=0, keepdims=True)
    var = jnp.mean((y - mean) ** 2, axis=0, keepdims=True)
    y = (y - mean) * jax.lax.rsqrt(var + eps)
    return y * gamma[None, :] + beta[None, :]


if __name__ == "__main__":
    def init(key, N, Fin, Fout):
        kx, kw, kb = jax.random.split(key, 3)
        x = jax.random.normal(kx, (N, Fin), jnp.float32)
        bound = 1.0 / (Fin ** 0.5)
        weight = jax.random.uniform(kw, (Fout, Fin), jnp.float32, -bound, bound)
        bias = jax.random.uniform(kb, (Fout,), jnp.float32, -bound, bound)
        gamma = jnp.ones((Fout,), jnp.float32)    # BatchNorm1d default affine init
        beta = jnp.zeros((Fout,), jnp.float32)
        return x, weight, bias, gamma, beta

    # 1) Small unaligned problem -> fused single-call fast path (f32, strict).
    x1, w1, b1, g1, be1 = init(jax.random.PRNGKey(0), 10, 32, 24)
    p_f32 = make_fcrb_params(w1, b1, g1, be1, mxu_dtype=jnp.float32)
    out = jax.block_until_ready(fcrb_forward(x1, p_f32))
    ref1 = _reference(x1, w1, b1, g1, be1)
    assert out.shape == (10, 24)
    assert jnp.allclose(out, ref1, atol=1e-4, rtol=1e-4), float(
        jnp.max(jnp.abs(out - ref1)))

    # 1b) Same small problem with the recommended bf16 MXU default (fused path);
    #     looser tolerance reflects bf16 operand precision.
    p_bf = make_fcrb_params(w1, b1, g1, be1)      # mxu_dtype defaults to bfloat16
    out_bf = jax.block_until_ready(fcrb_forward(x1, p_bf))
    assert jnp.allclose(out_bf, ref1, atol=5e-2, rtol=5e-2), float(
        jnp.max(jnp.abs(out_bf - ref1)))

    # 2) Two-pass tiled path (ragged last row tile, 2-D grid over rows x fout),
    #    f32 MXU operands for a strict numerical check.
    x2, w2, b2, g2, be2 = init(jax.random.PRNGKey(1), 300, 160, 200)
    p2_f32 = make_fcrb_params(w2, b2, g2, be2, mxu_dtype=jnp.float32)
    out2 = jax.block_until_ready(
        fcrb_forward(x2, p2_f32, tile_m=128, tile_n=128, force_two_pass=True))
    ref2 = _reference(x2, w2, b2, g2, be2)
    assert out2.shape == (300, 200)
    assert jnp.allclose(out2, ref2, atol=1e-4, rtol=1e-4), float(
        jnp.max(jnp.abs(out2 - ref2)))

    # 3) Two-pass path with the default bf16 MXU operands and bf16 y staging.
    p2_bf = make_fcrb_params(w2, b2, g2, be2)
    out2_bf = jax.block_until_ready(
        fcrb_forward(x2, p2_bf, tile_m=128, tile_n=128, force_two_pass=True))
    assert out2_bf.shape == (300, 200)
    assert jnp.allclose(out2_bf, ref2, atol=5e-2, rtol=5e-2), float(
        jnp.max(jnp.abs(out2_bf - ref2)))

    print("KERNEL_OK")
</pallas_src>

<mosaic_0001>
module attributes {stable_mosaic.version = 11 : i64} {
  func.func @_fused_fcrb_kernel(%arg0: memref<10x128xf32, #tpu.memory_space<vmem>>, %arg1: memref<128x128xf32, #tpu.memory_space<vmem>>, %arg2: memref<1x128xf32, #tpu.memory_space<vmem>>, %arg3: memref<1x128xf32, #tpu.memory_space<vmem>>, %arg4: memref<1x128xf32, #tpu.memory_space<vmem>>, %arg5: memref<10x128xf32, #tpu.memory_space<vmem>>) attributes {dimension_semantics = [], scalar_prefetch = 0 : i64, scratch_operands = 0 : i64, tpu.core_type = #tpu.core_type<tc>} {
    %c0 = arith.constant 0 : index
    %c0_0 = arith.constant 0 : index
    %0 = vector.load %arg0[%c0, %c0_0] : memref<10x128xf32, #tpu.memory_space<vmem>>, vector<10x128xf32>
    %c0_1 = arith.constant 0 : index
    %c0_2 = arith.constant 0 : index
    %1 = vector.load %arg1[%c0_1, %c0_2] : memref<128x128xf32, #tpu.memory_space<vmem>>, vector<128x128xf32>
    %cst = arith.constant dense<0.000000e+00> : vector<10x128xf32>
    %2 = tpu.matmul %0, %1, %cst {dimension_numbers = #tpu.dot_dimension_numbers<[1], [0], [0], [1], [0, 0, 1, 1], [], []>} : vector<10x128xf32>, vector<128x128xf32>, vector<10x128xf32> -> vector<10x128xf32>
    %c0_3 = arith.constant 0 : index
    %c0_4 = arith.constant 0 : index
    %3 = vector.load %arg2[%c0_3, %c0_4] : memref<1x128xf32, #tpu.memory_space<vmem>>, vector<1x128xf32>
    %4 = vector.broadcast %3 : vector<1x128xf32> to vector<10x128xf32>
    %5 = arith.addf %2, %4 : vector<10x128xf32>
    %cst_5 = arith.constant 0.000000e+00 : f32
    %6 = vector.broadcast %cst_5 : f32 to vector<10x128xf32>
    %7 = arith.maximumf %5, %6 : vector<10x128xf32>
    %cst_6 = arith.constant dense<0.000000e+00> : vector<128xf32>
    %8 = vector.multi_reduction <add>, %7, %cst_6 [0] : vector<10x128xf32> to vector<128xf32>
    %9 = vector.shape_cast %8 : vector<128xf32> to vector<1x128xf32>
    %cst_7 = arith.constant 1.000000e-01 : f32
    %10 = vector.broadcast %cst_7 : f32 to vector<1x128xf32>
    %11 = arith.mulf %9, %10 : vector<1x128xf32>
    %12 = vector.broadcast %11 : vector<1x128xf32> to vector<10x128xf32>
    %13 = arith.subf %7, %12 : vector<10x128xf32>
    %14 = arith.mulf %13, %13 : vector<10x128xf32>
    %cst_8 = arith.constant dense<0.000000e+00> : vector<128xf32>
    %15 = vector.multi_reduction <add>, %14, %cst_8 [0] : vector<10x128xf32> to vector<128xf32>
    %16 = vector.shape_cast %15 : vector<128xf32> to vector<1x128xf32>
    %cst_9 = arith.constant 1.000000e-01 : f32
    %17 = vector.broadcast %cst_9 : f32 to vector<1x128xf32>
    %18 = arith.mulf %16, %17 : vector<1x128xf32>
    %cst_10 = arith.constant 9.99999974E-6 : f32
    %19 = vector.broadcast %cst_10 : f32 to vector<1x128xf32>
    %20 = arith.addf %18, %19 : vector<1x128xf32>
    %21 = math.rsqrt %20 : vector<1x128xf32>
    %c0_11 = arith.constant 0 : index
    %c0_12 = arith.constant 0 : index
    %22 = vector.load %arg3[%c0_11, %c0_12] : memref<1x128xf32, #tpu.memory_space<vmem>>, vector<1x128xf32>
    %23 = arith.mulf %22, %21 : vector<1x128xf32>
    %c0_13 = arith.constant 0 : index
    %c0_14 = arith.constant 0 : index
    %24 = vector.load %arg4[%c0_13, %c0_14] : memref<1x128xf32, #tpu.memory_space<vmem>>, vector<1x128xf32>
    %25 = arith.mulf %11, %23 : vector<1x128xf32>
    %26 = arith.subf %24, %25 : vector<1x128xf32>
    %27 = vector.broadcast %23 : vector<1x128xf32> to vector<10x128xf32>
    %28 = arith.mulf %7, %27 : vector<10x128xf32>
    %29 = vector.broadcast %26 : vector<1x128xf32> to vector<10x128xf32>
    %30 = arith.addf %28, %29 : vector<10x128xf32>
    %c0_15 = arith.constant 0 : index
    %c0_16 = arith.constant 0 : index
    %31 = vector.load %arg5[%c0_15, %c0_16] : memref<10x128xf32, #tpu.memory_space<vmem>>, vector<10x128xf32>
    tpu.vector_store %arg5[%c0_15, %c0_16], %30 {strides = array<i32>} : memref<10x128xf32, #tpu.memory_space<vmem>>, vector<10x128xf32>,
    return
  }
}

</mosaic_0001>

<bundles_post_ra>
// kernel: tpu_custom_call.1
= control target key start
LH: loop header
LB: loop body
LE: loop exit
PB: predicated region body
PF: predicated region fallthrough
CT: control target
= control target key end

     0   :  { %10 = vsyncpa [#allocation3], 0  ;;  %s337_s0 = inlined_call_operand.hbm [shape: f32[10,128], index: 0, kind: input, shape index: {}]   ;;  %s338_s1 = inlined_call_operand.hbm [shape: f32[128,128], index: 1, kind: input, shape index: {}]   ;;  %s339_s2 = inlined_call_operand.vmem [shape: f32[1,128], index: 2, kind: input, shape index: {}]   ;;  %s340_s3 = inlined_call_operand.vmem [shape: f32[1,128], index: 3, kind: input, shape index: {}]   ;;  %s341_s4 = inlined_call_operand.vmem [shape: f32[1,128], index: 4, kind: input, shape index: {}]   ;;  %s342_s5 = inlined_call_operand.hbm [shape: f32[10,128], index: 5, kind: output, shape index: {}]  }
   0x1   :  { %11 = vsyncpa [#allocation6], 0 }
   0x2   :  { %12 = vsyncpa [#allocation4], 0  ;;  %s17_s20 = sshll.u32 %s337_s0, 4  ;;  %s273_s21 = smov [#allocation2]   ;;  %s18_s20 = int_to_ptr.hbm [resolvable:$true] %s17_s20 }
   0x3   :  { %s19_s22 = sshll.u32 %s273_s21, 4  ;;  %s30_s25 = sshll.u32 %s338_s1, 4  ;;  %s20_s22 = int_to_ptr.vmem [resolvable:$true] %s19_s22  ;;  %s31_s25 = int_to_ptr.hbm [resolvable:$true] %s30_s25 }
   0x4   :  { %s274_s26 = smov 128   ;;  %s275_s27 = smov 8  }
   0x5   :  { %25 = dma.hbm_to_vmem [thread:$0]  %s18_s20, 256, %s20_s22, [#allocation3], %s274_s26, %s274_s26, %s275_s27  }
   0x6   :  { %s276_s28 = smov [#allocation5]  }
   0x7   :  { %s32_s29 = sshll.u32 %s276_s28, 4  ;;  %s33_s29 = int_to_ptr.vmem [resolvable:$true] %s32_s29 }
   0x8   :  { %38 = dma.hbm_to_vmem [thread:$0]  %s31_s25, 2048, %s33_s29, [#allocation6], %s274_s26, %s274_s26, %s275_s27  }
   0x9   :  { %267 = dma.done.wait [#allocation3], 256  }
   0xa   :  { %268 = vsyncadd [#allocation3], 4294967040 }
   0xb   :  { %269 = dma.done.wait [#allocation6], 2048  }
   0xc   :  { %270 = vsyncadd [#allocation6], 4294965248  ;;  %v70_v0 = vld [vmem:[#allocation5 + $0x78] sm:$0xff]  ;;  %v69_v1 = vld [vmem:[#allocation5 + $0x70] sm:$0xff]  ;;  %vm100_vm0 = vcmask 1041408   ;;  %s277_s8 = smov [#allocation7]  }
   0xd   :  { %171 = vmatpush.msra.mxu1 %v70_v0  ;;  %75 = vmatpush.msra.mxu0 %v70_v0  ;;  %v68_v2 = vld [vmem:[#allocation5 + $0x68] sm:$0xff]  ;;  %v67_v3 = vld [vmem:[#allocation5 + $0x60] sm:$0xff]  ;;  %v66_v4 = vld [vmem:[#allocation5 + $0x58] sm:$0xff]  ;;  %s155_s9 = sshll.u32 %s277_s8, 4  ;;  %s157_s12 = sshll.u32 %s342_s5, 4  ;;  %s156_s9 = int_to_ptr.vmem [resolvable:$true] %s155_s9  ;;  %s158_s12 = int_to_ptr.hbm [resolvable:$true] %s157_s12 }
   0xe   :  { %v65_v5 = vld [vmem:[#allocation5 + $0x50] sm:$0xff]  ;;  %v64_v6 = vld [vmem:[#allocation5 + $0x48] sm:$0xff]  ;;  %v63_v7 = vld [vmem:[#allocation5 + $0x40] sm:$0xff] }
   0xf   :  { %172 = vmatpush.msra.mxu1 %v69_v1  ;;  %76 = vmatpush.msra.mxu0 %v69_v1  ;;  %v62_v8 = vld [vmem:[#allocation5 + $0x38] sm:$0xff]  ;;  %v61_v9 = vld [vmem:[#allocation5 + $0x30] sm:$0xff]  ;;  %v60_v10 = vld [vmem:[#allocation5 + $0x28] sm:$0xff] }
  0x10   :  { %v59_v11 = vld [vmem:[#allocation5 + $0x20] sm:$0xff]  ;;  %v58_v12 = vld [vmem:[#allocation5 + $0x18] sm:$0xff]  ;;  %v57_v13 = vld [vmem:[#allocation5 + $0x10] sm:$0xff] }
  0x11   :  { %173 = vmatpush.msra.mxu1 %v68_v2  ;;  %77 = vmatpush.msra.mxu0 %v68_v2  ;;  %v56_v14 = vld [vmem:[#allocation5 + $0x8] sm:$0xff]  ;;  %v55_v15 = vld [vmem:[#allocation5] sm:$0xff]  ;;  %v54_v16 = vld [vmem:[#allocation2 + $0x8] sm:$0x3] }
  0x12   :  { %v53_v17 = vld [vmem:[#allocation2] sm:$0xff] }
  0x13   :  { %174 = vmatpush.msra.mxu1 %v67_v3  ;;  %78 = vmatpush.msra.mxu0 %v67_v3  ;;  %v192_v18 = vld [vmem:[%s339_s2] ss:$0 sm:$0xff] }
  0x14   :  { %v134_v54 = vld [vmem:[%s340_s3] sm:$0x1] }
  0x15   :  { %175 = vmatpush.msra.mxu1 %v66_v4  ;;  %79 = vmatpush.msra.mxu0 %v66_v4  ;;  %v136_v57 = vld [vmem:[%s341_s4] sm:$0x1] }
  0x17   :  { %176 = vmatpush.msra.mxu1 %v65_v5  ;;  %80 = vmatpush.msra.mxu0 %v65_v5 }
  0x19   :  { %177 = vmatpush.msra.mxu1 %v64_v6  ;;  %81 = vmatpush.msra.mxu0 %v64_v6 }
  0x1b   :  { %178 = vmatpush.msra.mxu1 %v63_v7  ;;  %82 = vmatpush.msra.mxu0 %v63_v7 }
  0x1d   :  { %179 = vmatpush.msra.mxu1 %v62_v8  ;;  %83 = vmatpush.msra.mxu0 %v62_v8 }
  0x1f   :  { %180 = vmatpush.msra.mxu1 %v61_v9  ;;  %84 = vmatpush.msra.mxu0 %v61_v9 }
  0x21   :  { %181 = vmatpush.msra.mxu1 %v60_v10  ;;  %85 = vmatpush.msra.mxu0 %v60_v10 }
  0x23   :  { %182 = vmatpush.msra.mxu1 %v59_v11  ;;  %86 = vmatpush.msra.mxu0 %v59_v11 }
  0x25   :  { %183 = vmatpush.msra.mxu1 %v58_v12  ;;  %87 = vmatpush.msra.mxu0 %v58_v12 }
  0x27   :  { %184 = vmatpush.msra.mxu1 %v57_v13  ;;  %88 = vmatpush.msra.mxu0 %v57_v13 }
  0x29   :  { %185 = vmatpush.msra.mxu1 %v56_v14  ;;  %89 = vmatpush.msra.mxu0 %v56_v14 }
  0x2b   :  { %186 = vmatpush.msra.mxu1 %v55_v15  ;;  %90 = vmatpush.msra.mxu0 %v55_v15 }
  0x2c   :  { %94 = vmatmul.f32.vlgmr.msra.gmra.mxu1 %v54_v16  ;;  %91 = vmatmul.f32.vlgmr.msra.gmra.mxu0 %v53_v17 }
  0xa9   :  { %v95_v19 = vpop.f32.mrf.mxu1  ;;  %v92_v20 = vpop.f32.mrf.mxu0 }
  0xaa   :  { %v96_v21 = vadd.f32 %v192_v18, %v95_v19  ;;  %v93_v22 = vadd.f32 %v192_v18, %v92_v20 }
  0xac   :  { %v99_v23 = vmax.f32 %v96_v21, 0.0  ;;  %v98_v24 = vmax.f32 %v93_v22, 0.0 }
  0xae   :  { %v101_v25 = vsel %vm100_vm0, %v99_v23, 0.0 }
  0xaf   :  { %v102_v26 = vadd.f32 %v101_v25, %v98_v24 }
  0xb1   :  { %v103_v27 = vrot.slane %v102_v26, 4 }
  0xb3   :  { %v104_v28 = vadd.f32 %v103_v27, %v102_v26 }
  0xb5   :  { %v105_v29 = vrot.slane %v104_v28, 2 }
  0xb7   :  { %v106_v30 = vadd.f32 %v105_v29, %v104_v28 }
  0xb9   :  { %v107_v31 = vrot.slane %v106_v30, 1 }
  0xbb   :  { %v108_v32 = vadd.f32 %v107_v31, %v106_v30 }
  0xbd   :  { %v109_v33 = vmul.f32 0.1, %v108_v32 }
  0xbf   :  { %v110_v34 = vsub.f32 %v98_v24, %v109_v33  ;;  %v111_v35 = vsub.f32 %v99_v23, %v109_v33 }
  0xc1   :  { %v112_v36 = vmul.f32 %v110_v34, %v110_v34  ;;  %v113_v37 = vmul.f32 %v111_v35, %v111_v35 }
  0xc3   :  { %v114_v38 = vsel %vm100_vm0, %v113_v37, 0.0 }
  0xc4   :  { %v115_v39 = vadd.f32 %v114_v38, %v112_v36 }
  0xc6   :  { %v116_v40 = vrot.slane %v115_v39, 4 }
  0xc8   :  { %v117_v41 = vadd.f32 %v116_v40, %v115_v39 }
  0xca   :  { %v118_v42 = vrot.slane %v117_v41, 2 }
  0xcc   :  { %v119_v43 = vadd.f32 %v118_v42, %v117_v41 }
  0xce   :  { %v120_v44 = vrot.slane %v119_v43, 1 }
  0xd0   :  { %v121_v45 = vadd.f32 %v120_v44, %v119_v43 }
  0xd2   :  { %v122_v46 = vmul.f32 0.1, %v121_v45 }
  0xd4   :  { %v123_v47 = vadd.f32 1e-05, %v122_v46 }
  0xd6   :  { %193 = vrsqrt.f32 %v123_v47  ;;  %vm130_vm2 = vweird.f32 %v123_v47 }
  0xdc   :  { %v194_v48 = vpop.eup %193 }
  0xdd   :  { %v125_v49 = vmul.f32 %v194_v48, %v123_v47  ;;  %vm131_vm1 = vweird.f32 %v194_v48 }
  0xde   :  { %vm132_vm3 = vmor %vm130_vm2, %vm131_vm1 }
  0xdf   :  { %v126_v50 = vmul.f32 %v194_v48, %v125_v49 }
  0xe1   :  { %v127_v51 = vmul.f32 0.5, %v126_v50 }
  0xe3   :  { %v128_v52 = vsub.f32 1.5, %v127_v51 }
  0xe5   :  { %v129_v53 = vmul.f32 %v194_v48, %v128_v52 }
  0xe7   :  { %v133_v55 = vsel %vm132_vm3, %v194_v48, %v129_v53 }
  0xe8   :  { %v135_v56 = vmul.f32 %v134_v54, %v133_v55 }
  0xea   :  { %v137_v58 = vmul.f32 %v135_v56, %v109_v33  ;;  %v140_v59 = vperm.slane %v135_v56, 0 }
  0xec   :  { %v138_v60 = vsub.f32 %v136_v57, %v137_v58  ;;  %v142_v61 = vmul.f32 %v140_v59, %v98_v24  ;;  %v143_v62 = vmul.f32 %v140_v59, %v99_v23 }
  0xee   :  { %v145_v63 = vperm.slane %v138_v60, 0 }
  0xf0   :  { %v147_v0 = vadd.f32 %v145_v63, %v142_v61  ;;  %v148_v1 = vadd.f32 %v145_v63, %v143_v62 }
  0xf2   :  { %149 = vst [vmem:[#allocation7] sm:$0xff] %v147_v0 }
  0xf3   :  { %150 = vst [vmem:[#allocation7 + $0x8] sm:$0x3] %v148_v1 }
  0xf4   :  { %163 = dma.vmem_to_hbm [thread:$0]  %s156_s9, 256, %s158_s12, [#allocation4], %s274_s26, %s274_s26, %s275_s27  }
  0xf5   :  { %271 = dma.done.wait [#allocation4], 256  }
  0xf6   :  { %272 = vsyncadd [#allocation4], 4294967040 }
  0xf7   :  { %168 = vsyncpa [#allocation3], 1 }
  0xf8   :  { %169 = vsyncpa [#allocation6], 1 }
  0xf9   :  { %170 = vsyncpa [#allocation4], 1 }

</bundles_post_ra>
